<compile_context>
chip_gen: v7x
topology: tpu7x:2x2x1
jax: 0.10.0
libtpu: 0.0.40
codegen_flags: <defaults>
</compile_context>

<pallas_src>
import jax
import jax.numpy as jnp
from jax.experimental import pallas as pl
from jax.experimental.pallas import tpu as pltpu


def _value_head_kernel(x_ref, w_ref, b_ref, o_ref):
    # x_ref: (TM, H) VMEM (input dtype)   w_ref: (1, H) VMEM
    # b_ref: (1,) SMEM f32                o_ref: (TM, 1) VMEM
    x = x_ref[...]
    w = w_ref[...].astype(x.dtype)                 # (1, H), broadcast over rows
    # Native-dtype multiply (bf16 VALU on v6e/v7x), f32 accumulation + tanh.
    s = jnp.sum(x * w, axis=-1, keepdims=True, dtype=jnp.float32)   # (TM, 1)
    o_ref[...] = jnp.tanh(s + b_ref[0]).astype(o_ref.dtype)


def _round_up(x, m):
    return ((x + m - 1) // m) * m


def _tile_target_bytes():
    """Per-x-block byte budget, chosen per TPU generation (perf-review item)."""
    try:
        kind = jax.devices()[0].device_kind.lower()
    except Exception:
        kind = ""
    if "v5 lite" in kind or "v5e" in kind or "v5litepod" in kind:
        return 6 << 20      # v5e: keep 2x tile well under the small scoped-VMEM budget
    if "v6" in kind or "v7" in kind:
        return 14 << 20     # v6e/v7x: larger tiles amortize per-grid-step overhead
    return 8 << 20          # conservative fallback


def _pick_tm(m, h, itemsize, target_bytes, cap=2048):
    """Row-tile size: ~target_bytes per x block, multiple of 8, >=2 tiles when possible."""
    if m <= 8:
        return m                                    # single full-extent block
    tm = target_bytes // max(1, h * itemsize)
    half = _round_up(-(-m // 2), 8)                 # keep >=2 balanced tiles (v7x megacore)
    tm = min(tm, cap, half, _round_up(m, 8))
    return max(8, (tm // 8) * 8)


def value_head_forward(hidden_states, weight, bias):
    """hidden_states: (B, S, H); weight: (1, H) [PyTorch Linear layout]; bias: (1,).

    Returns tanh(hidden_states @ weight.T + bias) of shape (B, S, 1).
    """
    B, S, H = hidden_states.shape
    C, Hw = weight.shape
    assert Hw == H and C == 1, "ValueHead projects to a single scalar per token"

    M = B * S
    itemsize = jnp.dtype(hidden_states.dtype).itemsize
    w_itemsize = jnp.dtype(weight.dtype).itemsize
    TM = _pick_tm(M, H, itemsize, _tile_target_bytes())
    G = pl.cdiv(M, TM)

    x2d = hidden_states.reshape(M, H)               # free reshape, no HBM copy
    b1 = bias.reshape(1).astype(jnp.float32)

    # Explicit scoped-VMEM budget: double-buffered x block + sublane-padded
    # weight + lane-padded output buffers + generous headroom.
    vmem_est = (2 * TM * H * itemsize               # x double buffer
                + 2 * 8 * H * w_itemsize            # weight, sublane-padded to 8 rows
                + 2 * TM * 128 * itemsize)          # output, lane-padded to 128
    vmem_limit = int(min(max(vmem_est + (4 << 20), 24 << 20), 56 << 20))

    out2d = pl.pallas_call(
        _value_head_kernel,
        out_shape=jax.ShapeDtypeStruct((M, 1), hidden_states.dtype),
        grid_spec=pltpu.PrefetchScalarGridSpec(
            num_scalar_prefetch=0,
            grid=(G,),
            in_specs=[
                pl.BlockSpec((TM, H), lambda i: (i, 0)),            # streamed activations
                pl.BlockSpec((1, H), lambda i: (0, 0)),             # weight row, resident
                pl.BlockSpec(memory_space=pltpu.MemorySpace.SMEM),  # bias scalar
            ],
            out_specs=pl.BlockSpec((TM, 1), lambda i: (i, 0)),
        ),
        compiler_params=pltpu.CompilerParams(
            dimension_semantics=("parallel",),        # megacore split on v7x
            vmem_limit_bytes=vmem_limit,
        ),
        cost_estimate=pl.CostEstimate(
            flops=2 * M * H,
            transcendentals=M,
            bytes_accessed=M * H * itemsize + H * w_itemsize + M * itemsize + 4,
        ),
    )(x2d, weight, b1)

    return out2d.reshape(B, S, 1)


if __name__ == "__main__":
    key = jax.random.PRNGKey(0)

    # Small shapes consistent with a GPT-J value head (num_labels=1: scalar per
    # token).  The second case makes B*S % TM != 0 to exercise the partial
    # tail-block / masked-writeback path that replaced the old jnp.pad.
    cases = [(2, 8, 32), (2, 9, 32)]
    C = 1

    for B, S, H in cases:
        key, k_x, k_w, k_b = jax.random.split(key, 4)
        hidden_states = jax.random.normal(k_x, (B, S, H), dtype=jnp.float32)
        bound = 1.0 / H ** 0.5
        # PyTorch nn.Linear layout: weight (out_features, in_features) = (1, H).
        weight = jax.random.uniform(k_w, (C, H), dtype=jnp.float32,
                                    minval=-bound, maxval=bound)
        bias = jax.random.uniform(k_b, (C,), dtype=jnp.float32,
                                  minval=-bound, maxval=bound)

        out = value_head_forward(hidden_states, weight, bias)
        out = jax.block_until_ready(out)

        # Pure-JAX reference check.
        ref = jnp.tanh(hidden_states @ weight.T + bias)
        assert out.shape == (B, S, C)
        assert jnp.allclose(out, ref, atol=1e-5, rtol=1e-5)

    print("KERNEL_OK")
</pallas_src>

<mosaic_0001>
module attributes {stable_mosaic.version = 11 : i64} {
  func.func @_value_head_kernel(%arg0: i32, %arg1: memref<8x32xf32, #tpu.memory_space<vmem>>, %arg2: memref<1x32xf32, #tpu.memory_space<vmem>>, %arg3: memref<1xf32, #tpu.memory_space<smem>>, %arg4: memref<8x1xf32, #tpu.memory_space<vmem>>) attributes {dimension_semantics = [#tpu.dimension_semantics<parallel>], iteration_bounds = array<i64: 2>, scalar_prefetch = 0 : i64, scratch_operands = 0 : i64, tpu.core_type = #tpu.core_type<tc>, window_params = [{transform_indices = @transform_0, window_bounds = array<i64: 8, 32>}, {pipeline_mode = #tpu.pipeline_mode<synchronous>, transform_indices = @transform_1, window_bounds = array<i64: 1, 32>}, {transform_indices = @transform_2, window_bounds = array<i64: 1>}, {transform_indices = @transform_3, window_bounds = array<i64: 8, 1>}]} {
    %c0 = arith.constant 0 : index
    %c0_0 = arith.constant 0 : index
    %0 = vector.load %arg1[%c0, %c0_0] : memref<8x32xf32, #tpu.memory_space<vmem>>, vector<8x32xf32>
    %c0_1 = arith.constant 0 : index
    %c0_2 = arith.constant 0 : index
    %1 = vector.load %arg2[%c0_1, %c0_2] : memref<1x32xf32, #tpu.memory_space<vmem>>, vector<1x32xf32>
    %2 = vector.broadcast %1 : vector<1x32xf32> to vector<8x32xf32>
    %3 = arith.mulf %0, %2 : vector<8x32xf32>
    %cst = arith.constant dense<0.000000e+00> : vector<8xf32>
    %4 = vector.multi_reduction <add>, %3, %cst [1] : vector<8x32xf32> to vector<8xf32>
    %5 = vector.shape_cast %4 : vector<8xf32> to vector<8x1xf32>
    %c0_3 = arith.constant 0 : index
    %6 = memref.load %arg3[%c0_3] : memref<1xf32, #tpu.memory_space<smem>>
    %7 = vector.broadcast %6 : f32 to vector<8x1xf32>
    %8 = arith.addf %5, %7 : vector<8x1xf32>
    %9 = math.tanh %8 : vector<8x1xf32>
    %c0_4 = arith.constant 0 : index
    %c0_5 = arith.constant 0 : index
    %10 = vector.load %arg4[%c0_4, %c0_5] : memref<8x1xf32, #tpu.memory_space<vmem>>, vector<8x1xf32>
    tpu.vector_store %arg4[%c0_4, %c0_5], %9 {strides = array<i32>} : memref<8x1xf32, #tpu.memory_space<vmem>>, vector<8x1xf32>,
    return
  }
  func.func @transform_0(%arg0: i32) -> (i32, i32) {
    %c0_i32 = arith.constant 0 : i32
    %c0_i32_0 = arith.constant 0 : i32
    return %arg0, %c0_i32 : i32, i32
  }
  func.func @transform_1(%arg0: i32) -> (i32, i32) {
    %c0_i32 = arith.constant 0 : i32
    %c0_i32_0 = arith.constant 0 : i32
    %c0_i32_1 = arith.constant 0 : i32
    return %c0_i32, %c0_i32_0 : i32, i32
  }
  func.func @transform_2(%arg0: i32) -> i32 {
    %c0_i32 = arith.constant 0 : i32
    %c0_i32_0 = arith.constant 0 : i32
    return %c0_i32 : i32
  }
  func.func @transform_3(%arg0: i32) -> (i32, i32) {
    %c0_i32 = arith.constant 0 : i32
    %c0_i32_0 = arith.constant 0 : i32
    return %arg0, %c0_i32 : i32, i32
  }
}

</mosaic_0001>

<bundles_post_ra>
// kernel: tpu_custom_call.1
= control target key start
LH: loop header
LB: loop body
LE: loop exit
PB: predicated region body
PF: predicated region fallthrough
CT: control target
= control target key end

     0   :  { %s523_s0 = inlined_call_operand.hbm [shape: f32[16,32], index: 0, kind: input, shape index: {}]   ;;  %s524_s1 = inlined_call_operand.vmem [shape: f32[1,32], index: 1, kind: input, shape index: {}]   ;;  %s525_s2 = inlined_call_operand.<no memory space> [shape: f32[1], index: 2, kind: input, shape index: {}]   ;;  %s526_s3 = inlined_call_operand.vmem [shape: f32[16,1], index: 3, kind: output, shape index: {}]  }
   0x1   :  { %8 = sst [smem:[#allocation2]] %s525_s2 }
   0x2   :  { %9 = vsyncpa [#allocation4], 0 }
   0x3   :  { %11 = vsyncpa [#allocation4 + $0x1], 0  ;;  %s413_s14 = smov 0   ;;  %s415_s15 = smov 0  }
   0x4   :  { %s417_s16 = smov 0   ;;  %s419_s17 = smov 0  }
   0x5 LB: > { %s432_s2 = sadd.s32 4294967295, %s387_s17   ;;  %s435_s18 = sadd.s32 1, %s387_s17   ;;  %s387_s17 = sphi %s419_s17, %s534_s17   ;;  %s383_s16 = sphi %s417_s16, %s533_s16   ;;  %s379_s15 = sphi %s415_s15, %s532_s15   ;;  %s375_s14 = sphi %s413_s14, %s531_s14  }
   0x6   : > { %s21_s19 = ssub.s32 %s387_s17, %s435_s18  ;;  %s24_s20 = sadd.s32 1, %s383_s16 }
   0x7   : > { %p22_p0 = scmp.eq.s32.totalorder %s21_s19, 0  ;;  %p31_p1 = scmp.ne.s32.totalorder %s383_s16, %s379_s15 }
   0x8   : > { %p32_p2 = scmp.eq.s32.totalorder %s387_s17, 0  ;;  %p37_p3 = scmp.ne.s32.totalorder %s379_s15, %s375_s14 }
   0x9   : > { %s445_s21 = scalar_select %p22_p0, %s383_s16, %s24_s20  }
   0xa   : > { %p33_p4 = por %p32_p2, %p31_p1  ;;  %p38_p5 = scmp.eq.s32.totalorder %s432_s2, 0 }
   0xb   : > { %p288_p6 = scmp.lt.s32.totalorder %s387_s17, 2  ;;  %s135_s23 = sand.u32 1, %s383_s16  }
   0xc   : > { %p449_p7 = por %p38_p5, %p37_p3  ;;  %s274_s24 = sshll.u32 %s135_s23, 3 }
   0xd   : > { %s275_s25 = sshll.u32 %s387_s17, 7  ;;  %s139_s29 = scalar_lea.vmem [#allocation3], %s274_s24 }
   0xe   : > { %s458_s28 = scalar_lea.hbm %s523_s0, %s275_s25  ;;  %s146_s30 = sshll.u32 %s139_s29, 4  ;;  %s460_s30 = int_to_ptr.vmem [resolvable:$true] %s146_s30 }
   0xf   : > { %p462_p8 = pnand %p288_p6, %p33_p4  ;;  %s136_s5 = scalar_lea.sflag [#allocation4], %s135_s23 }
  0x10   : > { %s323_s6 = scalar_lea.hbm %s458_s28, 128  ;;  %s328_s9 = scalar_lea.hbm %s523_s0, 256 }
  0x11   : > { %p324_p11 = scmp.ne.s32.totalorder %s458_s28, %s323_s6  ;;  %p325_p12 = pneg %p462_p8 }
  0x12   : > { %p329_p1 = scmp.lt.u32.totalorder %s458_s28, %s523_s0  ;;  %p330_p2 = scmp.lt.u32.totalorder %s328_s9, %s323_s6 }
  0x13   : > { %p326_p13 = pnand %p325_p12, %p324_p11  ;;  %p332_p4 = scmp.lt.u32.totalorder %s323_s6, %s458_s28 }
  0x14   : > { %p331_p3 = por %p330_p2, %p329_p1 }
  0x15   : > { %p327_p0 = pneg %p326_p13 }
  0x16   : > { %p333_p5 = por %p332_p4, %p331_p3 }
  0x18   : > { %p334_p6 = pnand %p333_p5, %p327_p0 }
  0x1a   : > { %337 = shalt.err (!%p334_p6)
}
  0x1b   : > { %s338_s12 = scalar_lea.vmem %s460_s30, 128  ;;  %s389_s13 = smov [#allocation3]  }
  0x1c   : > { %p339_p11 = scmp.ne.s32.totalorder %s460_s30, %s338_s12  ;;  %s343_s14 = sshll.u32 %s389_s13, 4  ;;  %s344_s14 = int_to_ptr.vmem [resolvable:$false] %s343_s14 }
  0x1d   : > { %s345_s19 = scalar_lea.vmem %s344_s14, 256  ;;  %p346_p10 = scmp.lt.s32.totalorder %s460_s30, %s344_s14 }
  0x1e   : > { %p341_p13 = pnand %p339_p11, %p325_p12  ;;  %p347_p1 = scmp.lt.s32.totalorder %s345_s19, %s338_s12 }
  0x20   : > { %p342_p9 = pneg %p341_p13  ;;  %p348_p2 = por %p347_p1, %p346_p10 }
  0x22   : > { %p349_p3 = pnand %p348_p2, %p342_p9 }
  0x24   : > { %352 = shalt.err (!%p349_p3)
}
  0x25   : > { %287 = dma.hbm_to_vmem [thread:$0]  (!%p462_p8), %s458_s28, 128, %s460_s30, %s136_s5  }
  0x26   : > { %p529_p0 = scmp.lt.s32.totalorder %s387_s17, 3  ;;  %p530_p4 = scmp.ge.s32.totalorder %s387_s17, 1 }
  0x28   : > { %p152_p12 = pnand %p530_p4, %p529_p0 }
  0x29   : > { %s157_s20 = sand.u32 (!%p152_p12), 1, %s379_s15  }
  0x2a   : > { %155 = sbr.rel (%p152_p12) target bundleno = 211 (0xd3), region = 32  ;;  %s277_s23 = sshll.u32 (!%p152_p12), %s157_s20, 3 }
  0x2b   : > { %s158_s24 = scalar_lea.sflag (!%p152_p12), [#allocation4], %s157_s20  ;;  %s161_s25 = scalar_lea.vmem (!%p152_p12), [#allocation3], %s277_s23 }
  0x31   : > { %370 = dma.done.wait (%p449_p7), %s158_s24, 128  }
  0x32   : > { %372 = vsyncadd (%p449_p7), %s158_s24, 4294967168  ;;  %v187_v0 = vld [vmem:[%s161_s25] sm:$0xff]  ;;  %vm196_vm0 = vcmask 261120   ;;  %s200_s17 = sld [smem:[#allocation2]]  ;;  %p183_p8 = scmp.lt.s32.totalorder %s432_s2, 1  ;;  %vm204_vm1 = vcmask 7168  }
  0x33   : > { %v279_v1 = vld [vmem:[%s524_s1] ss:$0 sm:$0xff] }
  0x34   : > { %v195_v2 = vmul.f32 %v279_v1, %v187_v0  ;;  %s536_s2 = smov (!%p183_p8, %s432_s2), 1 }
  0x35   : > { %s278_s22 = sshll.u32 %s536_s2, 3 }
  0x36   : > { %v197_v3 = vsel %vm196_vm0, %v195_v2, 0.0  ;;  %s186_s30 = scalar_lea.vmem %s526_s3, %s278_s22 }
  0x37   : > { %198 = vadd.xlane.f32.xlu0 %v197_v3 }
  0x38   : > { %v201_v4 = vstv %s200_s17 }
  0xc4   : > { %v199_v5 = vpop.xlane.xlu0 %198 }
  0xc5   : > { %v202_v6 = vadd.f32 %v201_v4, %v199_v5 }
  0xc7   : > { %321 = vtanh.f32 %v202_v6 }
  0xd1   : > { %v322_v7 = vpop.eup %321 }
  0xd2   : > { %205 = vst.msk [vmem:[%s186_s30] sm:$0xff] %vm204_vm1, %v322_v7 }
  0xd3 PF: > { %p14_p7 = scmp.ge.s32.totalorder %s435_s18, 4   ;;  %s531_s14 = smov %s379_s15 }
  0xd4   : > { %s532_s15 = smov %s383_s16  ;;  %s533_s16 = smov %s445_s21 }
  0xd5   : > { %s534_s17 = smov %s435_s18  ;;  %16 = sbr.rel (!%p14_p7) target bundleno = 5 (0x5), region = 72 }
  0xdc   :  { %225 = vsyncpa [#allocation4], 1 }
  0xdd   :  { %227 = vsyncpa [#allocation4 + $0x1], 1 }

</bundles_post_ra>
